<compile_context>
chip_gen: v7x
topology: tpu7x:2x2x1
jax: 0.10.0
libtpu: 0.0.40
codegen_flags: <defaults>
</compile_context>

<pallas_src>
import jax
import jax.numpy as jnp
from jax.experimental import pallas as pl
from jax.experimental.pallas import tpu as pltpu

GRID_LS = 32
NGR = NGZ = 16
PHYSICS_LS = 64
NIN = NGR + NGZ + PHYSICS_LS      # 96 : packed input slab width [r | z | ph]
S1 = 96                           # fused stage-1 width [p(32) | r-h(32) | z-h(32)]


# ----------------------------------------------------------------------------
# Kernel: one batch tile (TB, 96) -> (TB, 32).  Two MXU matmuls per tile.
# ----------------------------------------------------------------------------
def gridnet_kernel(
    x_ref,                        # (TB, 96)  packed [r | z | ph]
    wA_ref, bA_ref, btA_ref,      # (96, 96), (1, 96), (1, 96)  fused stage 1
    w2_ref, b2_ref, bt2_ref,      # (96, 32), (1, 32), (1, 32)  fused stage 2
    out_ref,                      # (TB, 32)
):
    x = x_ref[...]

    # Stage 1: fused [phys2grid | grid_r.L1 | grid_z.L1] in one matmul.
    y = jnp.dot(x, wA_ref[...], preferred_element_type=jnp.float32) + bA_ref[...]
    y = y * jax.nn.sigmoid(btA_ref[...] * y)        # ActF, per-column beta

    # Stage 2: fused [grid_r.L2 | grid_z.L2]; phys rows of w2 are zero, so the
    # full 96-wide y can be fed straight in (no slicing before the matmul).
    g = jnp.dot(y, w2_ref[...], preferred_element_type=jnp.float32) + b2_ref[...]
    g = g * jax.nn.sigmoid(bt2_ref[...] * g)        # gr1 = [r_out | z_out]

    # phys2grid output lives in lanes 0:32 of y (lane offset 0 -> free view).
    out_ref[...] = (g * y[:, :GRID_LS]).astype(out_ref.dtype)


# ----------------------------------------------------------------------------
# Parameter fusion (done once in the wrapper; tiny, plain JAX)
# ----------------------------------------------------------------------------
def _fuse_params(p):
    f32 = jnp.float32
    b = p["betas"]                # [beta_r1, beta_r2, beta_z1, beta_z2, beta_p]

    # Stage-1 weight: input rows [r(16) | z(16) | ph(64)],
    #                 output cols [p(32) | r-hidden(32) | z-hidden(32)].
    wA = jnp.zeros((NIN, S1), f32)
    wA = wA.at[0:16, 32:64].set(p["wr1"])
    wA = wA.at[16:32, 64:96].set(p["wz1"])
    wA = wA.at[32:96, 0:32].set(p["wp"])
    bA = jnp.concatenate([p["bp"], p["br1"], p["bz1"]], axis=1)       # (1, 96)
    btA = jnp.concatenate([jnp.full((1, 32), b[4], f32),
                           jnp.full((1, 32), b[0], f32),
                           jnp.full((1, 32), b[2], f32)], axis=1)     # (1, 96)

    # Stage-2 weight: input rows [p(32)=0 | r-hidden(32) | z-hidden(32)],
    #                 output cols [r_out(16) | z_out(16)]  == gr1 order.
    w2 = jnp.zeros((S1, GRID_LS), f32)
    w2 = w2.at[32:64, 0:16].set(p["wr2"])
    w2 = w2.at[64:96, 16:32].set(p["wz2"])
    b2 = jnp.concatenate([p["br2"], p["bz2"]], axis=1)                # (1, 32)
    bt2 = jnp.concatenate([jnp.full((1, 16), b[1], f32),
                           jnp.full((1, 16), b[3], f32)], axis=1)     # (1, 32)

    return dict(wA=wA, bA=bA, btA=btA, w2=w2, b2=b2, bt2=bt2)


# ----------------------------------------------------------------------------
# Wrapper
# ----------------------------------------------------------------------------
def gridnet_forward(r, z, ph, params, *, block_b=2048):
    """r: (B,16)  z: (B,16)  ph: (B,64)  ->  (B,32)."""
    B = r.shape[0]
    fused = _fuse_params(params)

    # Pack inputs lane-dense: one (B, 96) slab, one input DMA stream.
    x = jnp.concatenate([r, z, ph], axis=1).astype(jnp.float32)

    def _rup(n, m):
        return ((n + m - 1) // m) * m

    tb = min(_rup(block_b, 8), _rup(B, 8))        # batch tile (multiple of 8)
    b_pad = _rup(B, tb)
    if b_pad != B:
        x = jnp.pad(x, ((0, b_pad - B), (0, 0)))
    nb = b_pad // tb

    def full2d(shape):
        # Whole-array block, constant index -> VMEM-resident across all tiles.
        return pl.BlockSpec(shape, lambda i: (0, 0))

    grid_spec = pltpu.PrefetchScalarGridSpec(
        num_scalar_prefetch=0,
        grid=(nb,),
        in_specs=[
            pl.BlockSpec((tb, NIN), lambda i: (i, 0)),              # x tiles
            full2d((NIN, S1)), full2d((1, S1)), full2d((1, S1)),    # stage 1
            full2d((S1, GRID_LS)), full2d((1, GRID_LS)), full2d((1, GRID_LS)),
        ],
        out_specs=pl.BlockSpec((tb, GRID_LS), lambda i: (i, 0)),
    )

    out = pl.pallas_call(
        gridnet_kernel,
        out_shape=jax.ShapeDtypeStruct((b_pad, GRID_LS), jnp.float32),
        grid_spec=grid_spec,
        compiler_params=pltpu.CompilerParams(
            dimension_semantics=("parallel",),      # megacore on v7x
        ),
    )(
        x,
        fused["wA"], fused["bA"], fused["btA"],
        fused["w2"], fused["b2"], fused["bt2"],
    )
    return out[:B]


# ----------------------------------------------------------------------------
# Init + pure-JAX reference (mirrors the PyTorch module)
# ----------------------------------------------------------------------------
def init_params(key):
    """PyTorch-Linear-style init: uniform +-1/sqrt(fan_in)."""
    def linear(key, fan_in, fan_out):
        kw, kb = jax.random.split(key)
        bound = 1.0 / jnp.sqrt(jnp.float32(fan_in))
        w = jax.random.uniform(kw, (fan_in, fan_out), jnp.float32, -bound, bound)
        b = jax.random.uniform(kb, (1, fan_out), jnp.float32, -bound, bound)
        return w, b

    keys = jax.random.split(key, 5)
    wr1, br1 = linear(keys[0], NGR, 32)
    wr2, br2 = linear(keys[1], 32, GRID_LS // 2)
    wz1, bz1 = linear(keys[2], NGZ, 32)
    wz2, bz2 = linear(keys[3], 32, GRID_LS // 2)
    wp, bp = linear(keys[4], PHYSICS_LS, GRID_LS)
    betas = jnp.ones((5,), jnp.float32)     # ActF beta init = 1.0
    return dict(wr1=wr1, br1=br1, wr2=wr2, br2=br2,
                wz1=wz1, bz1=bz1, wz2=wz2, bz2=bz2,
                wp=wp, bp=bp, betas=betas)


def gridnet_reference(r, z, ph, p):
    def swish(x, beta):
        return x * jax.nn.sigmoid(beta * x)

    b = p["betas"]
    rr = swish(r @ p["wr1"] + p["br1"], b[0])
    rr = swish(rr @ p["wr2"] + p["br2"], b[1])
    zz = swish(z @ p["wz1"] + p["bz1"], b[2])
    zz = swish(zz @ p["wz2"] + p["bz2"], b[3])
    g2 = swish(ph @ p["wp"] + p["bp"], b[4])
    gr1 = jnp.concatenate([rr, zz], axis=1)
    return gr1 * g2


if __name__ == "__main__":
    key = jax.random.PRNGKey(0)
    kp, kr, kz, kph = jax.random.split(key, 4)
    params = init_params(kp)

    # Small test: single grid step.
    B = 8
    r = jax.random.normal(kr, (B, NGR), jnp.float32)
    z = jax.random.normal(kz, (B, NGZ), jnp.float32)
    ph = jax.random.normal(kph, (B, PHYSICS_LS), jnp.float32)

    out = jax.block_until_ready(gridnet_forward(r, z, ph, params))
    ref = gridnet_reference(r, z, ph, params)
    assert out.shape == (B, GRID_LS), out.shape
    assert jnp.allclose(out, ref, atol=1e-4, rtol=1e-4), "mismatch vs reference (B=8)"

    # Ragged-batch test: exercises tiling + padding path (3 grid steps).
    B2 = 300
    kr2, kz2, kph2 = jax.random.split(jax.random.PRNGKey(1), 3)
    r2 = jax.random.normal(kr2, (B2, NGR), jnp.float32)
    z2 = jax.random.normal(kz2, (B2, NGZ), jnp.float32)
    ph2 = jax.random.normal(kph2, (B2, PHYSICS_LS), jnp.float32)

    out2 = jax.block_until_ready(gridnet_forward(r2, z2, ph2, params, block_b=128))
    ref2 = gridnet_reference(r2, z2, ph2, params)
    assert out2.shape == (B2, GRID_LS), out2.shape
    assert jnp.allclose(out2, ref2, atol=1e-4, rtol=1e-4), "mismatch vs reference (B=300)"

    print("KERNEL_OK")
</pallas_src>

<mosaic_0001>
module attributes {stable_mosaic.version = 11 : i64} {
  func.func @gridnet_kernel(%arg0: i32, %arg1: memref<8x96xf32, #tpu.memory_space<vmem>>, %arg2: memref<96x96xf32, #tpu.memory_space<vmem>>, %arg3: memref<1x96xf32, #tpu.memory_space<vmem>>, %arg4: memref<1x96xf32, #tpu.memory_space<vmem>>, %arg5: memref<96x32xf32, #tpu.memory_space<vmem>>, %arg6: memref<1x32xf32, #tpu.memory_space<vmem>>, %arg7: memref<1x32xf32, #tpu.memory_space<vmem>>, %arg8: memref<8x32xf32, #tpu.memory_space<vmem>>) attributes {dimension_semantics = [#tpu.dimension_semantics<parallel>], iteration_bounds = array<i64: 1>, scalar_prefetch = 0 : i64, scratch_operands = 0 : i64, tpu.core_type = #tpu.core_type<tc>, window_params = [{transform_indices = @transform_0, window_bounds = array<i64: 8, 96>}, {pipeline_mode = #tpu.pipeline_mode<synchronous>, transform_indices = @transform_1, window_bounds = array<i64: 96, 96>}, {pipeline_mode = #tpu.pipeline_mode<synchronous>, transform_indices = @transform_2, window_bounds = array<i64: 1, 96>}, {pipeline_mode = #tpu.pipeline_mode<synchronous>, transform_indices = @transform_3, window_bounds = array<i64: 1, 96>}, {pipeline_mode = #tpu.pipeline_mode<synchronous>, transform_indices = @transform_4, window_bounds = array<i64: 96, 32>}, {pipeline_mode = #tpu.pipeline_mode<synchronous>, transform_indices = @transform_5, window_bounds = array<i64: 1, 32>}, {pipeline_mode = #tpu.pipeline_mode<synchronous>, transform_indices = @transform_6, window_bounds = array<i64: 1, 32>}, {transform_indices = @transform_7, window_bounds = array<i64: 8, 32>}]} {
    %c0 = arith.constant 0 : index
    %c0_0 = arith.constant 0 : index
    %0 = vector.load %arg1[%c0, %c0_0] : memref<8x96xf32, #tpu.memory_space<vmem>>, vector<8x96xf32>
    %c0_1 = arith.constant 0 : index
    %c0_2 = arith.constant 0 : index
    %1 = vector.load %arg2[%c0_1, %c0_2] : memref<96x96xf32, #tpu.memory_space<vmem>>, vector<96x96xf32>
    %cst = arith.constant dense<0.000000e+00> : vector<8x96xf32>
    %2 = tpu.matmul %0, %1, %cst {dimension_numbers = #tpu.dot_dimension_numbers<[1], [0], [0], [1], [0, 0, 1, 1], [], []>} : vector<8x96xf32>, vector<96x96xf32>, vector<8x96xf32> -> vector<8x96xf32>
    %c0_3 = arith.constant 0 : index
    %c0_4 = arith.constant 0 : index
    %3 = vector.load %arg3[%c0_3, %c0_4] : memref<1x96xf32, #tpu.memory_space<vmem>>, vector<1x96xf32>
    %4 = vector.broadcast %3 : vector<1x96xf32> to vector<8x96xf32>
    %5 = arith.addf %2, %4 : vector<8x96xf32>
    %c0_5 = arith.constant 0 : index
    %c0_6 = arith.constant 0 : index
    %6 = vector.load %arg4[%c0_5, %c0_6] : memref<1x96xf32, #tpu.memory_space<vmem>>, vector<1x96xf32>
    %7 = vector.broadcast %6 : vector<1x96xf32> to vector<8x96xf32>
    %8 = arith.mulf %7, %5 : vector<8x96xf32>
    %9 = arith.negf %8 : vector<8x96xf32>
    %10 = math.exp %9 : vector<8x96xf32>
    %cst_7 = arith.constant 1.000000e+00 : f32
    %11 = vector.broadcast %cst_7 : f32 to vector<8x96xf32>
    %12 = arith.addf %11, %10 : vector<8x96xf32>
    %13 = arith.divf %11, %12 : vector<8x96xf32>
    %14 = arith.mulf %5, %13 : vector<8x96xf32>
    %c0_8 = arith.constant 0 : index
    %c0_9 = arith.constant 0 : index
    %15 = vector.load %arg5[%c0_8, %c0_9] : memref<96x32xf32, #tpu.memory_space<vmem>>, vector<96x32xf32>
    %cst_10 = arith.constant dense<0.000000e+00> : vector<8x32xf32>
    %16 = tpu.matmul %14, %15, %cst_10 {dimension_numbers = #tpu.dot_dimension_numbers<[1], [0], [0], [1], [0, 0, 1, 1], [], []>} : vector<8x96xf32>, vector<96x32xf32>, vector<8x32xf32> -> vector<8x32xf32>
    %c0_11 = arith.constant 0 : index
    %c0_12 = arith.constant 0 : index
    %17 = vector.load %arg6[%c0_11, %c0_12] : memref<1x32xf32, #tpu.memory_space<vmem>>, vector<1x32xf32>
    %18 = vector.broadcast %17 : vector<1x32xf32> to vector<8x32xf32>
    %19 = arith.addf %16, %18 : vector<8x32xf32>
    %c0_13 = arith.constant 0 : index
    %c0_14 = arith.constant 0 : index
    %20 = vector.load %arg7[%c0_13, %c0_14] : memref<1x32xf32, #tpu.memory_space<vmem>>, vector<1x32xf32>
    %21 = vector.broadcast %20 : vector<1x32xf32> to vector<8x32xf32>
    %22 = arith.mulf %21, %19 : vector<8x32xf32>
    %23 = arith.negf %22 : vector<8x32xf32>
    %24 = math.exp %23 : vector<8x32xf32>
    %cst_15 = arith.constant 1.000000e+00 : f32
    %25 = vector.broadcast %cst_15 : f32 to vector<8x32xf32>
    %26 = arith.addf %25, %24 : vector<8x32xf32>
    %27 = arith.divf %25, %26 : vector<8x32xf32>
    %28 = arith.mulf %19, %27 : vector<8x32xf32>
    %29 = vector.extract_strided_slice %14 {offsets = [0, 0], sizes = [8, 32], strides = [1, 1]} : vector<8x96xf32> to vector<8x32xf32>
    %30 = arith.mulf %28, %29 : vector<8x32xf32>
    %c0_16 = arith.constant 0 : index
    %c0_17 = arith.constant 0 : index
    %31 = vector.load %arg8[%c0_16, %c0_17] : memref<8x32xf32, #tpu.memory_space<vmem>>, vector<8x32xf32>
    tpu.vector_store %arg8[%c0_16, %c0_17], %30 {strides = array<i32>} : memref<8x32xf32, #tpu.memory_space<vmem>>, vector<8x32xf32>,
    return
  }
  func.func @transform_0(%arg0: i32) -> (i32, i32) {
    %c0_i32 = arith.constant 0 : i32
    %c0_i32_0 = arith.constant 0 : i32
    return %arg0, %c0_i32 : i32, i32
  }
  func.func @transform_1(%arg0: i32) -> (i32, i32) {
    %c0_i32 = arith.constant 0 : i32
    %c0_i32_0 = arith.constant 0 : i32
    %c0_i32_1 = arith.constant 0 : i32
    return %c0_i32, %c0_i32_0 : i32, i32
  }
  func.func @transform_2(%arg0: i32) -> (i32, i32) {
    %c0_i32 = arith.constant 0 : i32
    %c0_i32_0 = arith.constant 0 : i32
    %c0_i32_1 = arith.constant 0 : i32
    return %c0_i32, %c0_i32_0 : i32, i32
  }
  func.func @transform_3(%arg0: i32) -> (i32, i32) {
    %c0_i32 = arith.constant 0 : i32
    %c0_i32_0 = arith.constant 0 : i32
    %c0_i32_1 = arith.constant 0 : i32
    return %c0_i32, %c0_i32_0 : i32, i32
  }
  func.func @transform_4(%arg0: i32) -> (i32, i32) {
    %c0_i32 = arith.constant 0 : i32
    %c0_i32_0 = arith.constant 0 : i32
    %c0_i32_1 = arith.constant 0 : i32
    return %c0_i32, %c0_i32_0 : i32, i32
  }
  func.func @transform_5(%arg0: i32) -> (i32, i32) {
    %c0_i32 = arith.constant 0 : i32
    %c0_i32_0 = arith.constant 0 : i32
    %c0_i32_1 = arith.constant 0 : i32
    return %c0_i32, %c0_i32_0 : i32, i32
  }
  func.func @transform_6(%arg0: i32) -> (i32, i32) {
    %c0_i32 = arith.constant 0 : i32
    %c0_i32_0 = arith.constant 0 : i32
    %c0_i32_1 = arith.constant 0 : i32
    return %c0_i32, %c0_i32_0 : i32, i32
  }
  func.func @transform_7(%arg0: i32) -> (i32, i32) {
    %c0_i32 = arith.constant 0 : i32
    %c0_i32_0 = arith.constant 0 : i32
    return %arg0, %c0_i32 : i32, i32
  }
}

</mosaic_0001>

<bundles_post_ra>
// kernel: tpu_custom_call.1
= control target key start
LH: loop header
LB: loop body
LE: loop exit
PB: predicated region body
PF: predicated region fallthrough
CT: control target
= control target key end

     0   :  { %v420_v3 = vmov 0.0|0.0   ;;  %vm421_vm0 = vmmov 0   ;;  %v422_v6 = vmov 0.0   ;;  %s565_s0 = inlined_call_operand.vmem [shape: f32[8,96], index: 0, kind: input, shape index: {}]   ;;  %s566_s1 = inlined_call_operand.vmem [shape: f32[96,96], index: 1, kind: input, shape index: {}]   ;;  %s567_s2 = inlined_call_operand.vmem [shape: f32[1,96], index: 2, kind: input, shape index: {}]   ;;  %s568_s3 = inlined_call_operand.vmem [shape: f32[1,96], index: 3, kind: input, shape index: {}]   ;;  %s569_s4 = inlined_call_operand.vmem [shape: f32[96,32], index: 4, kind: input, shape index: {}]   ;;  %s570_s5 = inlined_call_operand.vmem [shape: f32[1,32], index: 5, kind: input, shape index: {}]   ;;  %s571_s6 = inlined_call_operand.vmem [shape: f32[1,32], index: 6, kind: input, shape index: {}]   ;;  %s572_s7 = inlined_call_operand.hbm [shape: f32[8,32], index: 7, kind: output, shape index: {}]  }
   0x1   :  { %v28_v0 = vld [vmem:[%s566_s1] sm:$0xff]  ;;  %v29_v1 = vld [vmem:[%s566_s1 + $0x8] sm:$0xff]  ;;  %v30_v2 = vld [vmem:[%s566_s1 + $0x10] sm:$0xff]  ;;  %348 = vmatprep.subr.bf16.mxu0 %v420_v3  ;;  %318 = vmatprep.mubr.msk.f32.mxu0 %vm421_vm0, %v422_v6 }
   0x2   :  { %v349_v4 = vpack.c.bf16 %v29_v1, %v28_v0  ;;  %v31_v5 = vld [vmem:[%s566_s1 + $0x18] sm:$0xff]  ;;  %366 = vmatprep.subr.bf16.mxu1 %v420_v3  ;;  %345 = vmatprep.mubr.msk.f32.mxu1 %vm421_vm0, %v422_v6  ;;  %v32_v8 = vld [vmem:[%s566_s1 + $0x20] sm:$0xff]  ;;  %v33_v9 = vld [vmem:[%s566_s1 + $0x28] sm:$0xff] }
   0x3   :  { %v352_v7 = vpack.c.bf16 %v31_v5, %v30_v2 }
   0x4   :  { %350 = vmatpush3.bf16.msra.mxu0 %v349_v4 }
   0x5   :  { %351 = vmatprep.subr.bf16.mxu0 %v420_v3 }
   0x6   :  { %12 = vsyncpa [#allocation3], 0  ;;  %v355_v10 = vpack.c.bf16 %v33_v9, %v32_v8  ;;  %v34_v11 = vld [vmem:[%s566_s1 + $0x30] sm:$0xff]  ;;  %v35_v12 = vld [vmem:[%s566_s1 + $0x38] sm:$0xff]  ;;  %vm47_vm1 = vcmask 785408   ;;  %vm244_vm2 = vcmask 261120  }
   0x7   :  { %v358_v13 = vpack.c.bf16 %v35_v12, %v34_v11  ;;  %v36_v14 = vld [vmem:[%s566_s1 + $0x40] sm:$0xff]  ;;  %v37_v15 = vld [vmem:[%s566_s1 + $0x48] sm:$0xff]  ;;  %v38_v17 = vld [vmem:[%s566_s1 + $0x50] sm:$0xff] }
   0x8   :  { %353 = vmatpush3.bf16.msra.mxu0 %v352_v7  ;;  %v361_v16 = vpack.c.bf16 %v37_v15, %v36_v14  ;;  %v39_v18 = vld [vmem:[%s566_s1 + $0x58] sm:$0xff]  ;;  %v27_v20 = vld [vmem:[%s565_s0] sm:$0xff]  ;;  %v137_v22 = vld [vmem:[%s569_s4 + $0x8] sm:$0xff] }
   0x9   :  { %354 = vmatprep.subr.bf16.mxu0 %v420_v3  ;;  %v364_v19 = vpack.c.bf16 %v39_v18, %v38_v17  ;;  %v136_v21 = vld [vmem:[%s569_s4] sm:$0xff]  ;;  %v138_v24 = vld [vmem:[%s569_s4 + $0x10] sm:$0xff]  ;;  %v139_v25 = vld [vmem:[%s569_s4 + $0x18] sm:$0xff] }
   0xa   :  { %v367_v23 = vpack.c.bf16 %v137_v22, %v136_v21  ;;  %v370_v26 = vpack.c.bf16 %v139_v25, %v138_v24  ;;  %v140_v27 = vld [vmem:[%s569_s4 + $0x20] sm:$0xff]  ;;  %v141_v28 = vld [vmem:[%s569_s4 + $0x28] sm:$0xff]  ;;  %v142_v30 = vld [vmem:[%s569_s4 + $0x30] sm:$0xff] }
   0xb   :  { %v373_v29 = vpack.c.bf16 %v141_v28, %v140_v27  ;;  %v143_v31 = vld [vmem:[%s569_s4 + $0x38] sm:$0xff]  ;;  %v144_v33 = vld [vmem:[%s569_s4 + $0x40] sm:$0xff]  ;;  %v145_v34 = vld [vmem:[%s569_s4 + $0x48] sm:$0xff] }
   0xc   :  { %356 = vmatpush3.bf16.msra.mxu0 %v355_v10  ;;  %368 = vmatpush3.bf16.msra.mxu1 %v367_v23  ;;  %v376_v32 = vpack.c.bf16 %v143_v31, %v142_v30  ;;  %v379_v35 = vpack.c.bf16 %v145_v34, %v144_v33  ;;  %v146_v36 = vld [vmem:[%s569_s4 + $0x50] sm:$0xff]  ;;  %v147_v37 = vld [vmem:[%s569_s4 + $0x58] sm:$0xff]  ;;  %v260_v39 = vld [vmem:[%s567_s2] ss:$0 sm:$0xff] }
   0xd   :  { %357 = vmatprep.subr.bf16.mxu0 %v420_v3  ;;  %369 = vmatprep.subr.bf16.mxu1 %v420_v3  ;;  %v382_v38 = vpack.c.bf16 %v147_v37, %v146_v36  ;;  %v262_v41 = vld [vmem:[%s568_s3] ss:$0 sm:$0xff]  ;;  %s423_s3 = smov [#allocation2]  }
   0xe   :  { %v264_v50 = vld [vmem:[%s570_s5] ss:$0 sm:$0xff]  ;;  %s252_s8 = sshll.u32 %s423_s3, 4  ;;  %s253_s8 = int_to_ptr.vmem [resolvable:$true] %s252_s8 }
   0xf   :  { %v266_v52 = vld [vmem:[%s571_s6] ss:$0 sm:$0xff]  ;;  %s396_s5 = scalar_lea.vmem %s253_s8, 128  ;;  %p401_p1 = scmp.lt.s32.totalorder %s253_s8, %s253_s8 }
  0x10   :  { %359 = vmatpush3.bf16.msra.mxu0 %v358_v13  ;;  %371 = vmatpush3.bf16.msra.mxu1 %v370_v26  ;;  %p397_p0 = scmp.ne.s32.totalorder %s253_s8, %s396_s5  ;;  %p402_p2 = scmp.lt.s32.totalorder %s396_s5, %s396_s5 }
  0x11   :  { %360 = vmatprep.subr.bf16.mxu0 %v420_v3  ;;  %372 = vmatprep.subr.bf16.mxu1 %v420_v3 }
  0x12   :  { %p403_p3 = por %p402_p2, %p401_p1 }
  0x14   :  { %362 = vmatpush3.bf16.msra.mxu0 %v361_v16  ;;  %374 = vmatpush3.bf16.msra.mxu1 %v373_v29  ;;  %p404_p4 = pnand %p403_p3, %p397_p0 }
  0x15   :  { %363 = vmatprep.subr.bf16.mxu0 %v420_v3  ;;  %375 = vmatprep.subr.bf16.mxu1 %v420_v3 }
  0x18   :  { %365 = vmatpush3.bf16.msra.mxu0 %v364_v19  ;;  %377 = vmatpush3.bf16.msra.mxu1 %v376_v32 }
  0x19   :  { %378 = vmatprep.subr.bf16.mxu1 %v420_v3 }
  0x1b   :  { %319 = vmatmul.mubr.msk.f32.vlgmr.msra.gmra.mrb[0].mxu0 %vm47_vm1, %v27_v20 }
  0x1c   :  { %380 = vmatpush3.bf16.msra.mxu1 %v379_v35 }
  0x1d   :  { %381 = vmatprep.subr.bf16.mxu1 %v420_v3 }
  0x20   :  { %383 = vmatpush3.bf16.msra.mxu1 %v382_v38 }
  0xee   :  { %v117_v40 = vpop.f32.mrb[0].mxu0 }
  0xef   :  { %v118_v42 = vadd.f32 %v260_v39, %v117_v40  ;;  %v320_v43 = vpop.f32.mrb[1].mxu0 }
  0xf1   :  { %v128_v44 = vmul.f32 %v262_v41, %v118_v42 }
  0xf3   :  { %v263_v45 = vmul.f32 -1.442695, %v128_v44 }
  0xf5   :  { %388 = vpow2.f32 %v263_v45 }
  0xff   :  { %v389_v46 = vpop.eup %388 }
 0x100   :  { %v132_v47 = vadd.f32 1.0, %v389_v46 }
 0x102   :  { %390 = vrcp.f32 %v132_v47 }
 0x10c   :  { %v391_v48 = vpop.eup %390 }
 0x10d   :  { %v135_v49 = vmul.f32 %v391_v48, %v118_v42 }
 0x10f   :  { %346 = vmatmul.mubr.msk.f32.vlgmr.msra.gmra.mrb[0].mxu1 %vm47_vm1, %v135_v49 }
 0x1e2   :  { %v224_v51 = vpop.f32.mrb[0].mxu1 }
 0x1e3   :  { %v225_v53 = vadd.f32 %v264_v50, %v224_v51  ;;  %v347_v54 = vpop.f32.mrb[1].mxu1 }
 0x1e5   :  { %v235_v55 = vmul.f32 %v266_v52, %v225_v53 }
 0x1e7   :  { %v267_v56 = vmul.f32 -1.442695, %v235_v55 }
 0x1e9   :  { %392 = vpow2.f32 %v267_v56 }
 0x1f3   :  { %v393_v57 = vpop.eup %392 }
 0x1f4   :  { %v239_v58 = vadd.f32 1.0, %v393_v57 }
 0x1f6   :  { %394 = vrcp.f32 %v239_v58 }
 0x200   :  { %v395_v59 = vpop.eup %394 }
 0x201   :  { %v242_v60 = vmul.f32 %v395_v59, %v225_v53 }
 0x203   :  { %v243_v61 = vmul.f32 %v242_v60, %v135_v49 }
 0x205   :  { %245 = vst.msk [vmem:[#allocation2] sm:$0xff] %vm244_vm2, %v243_v61 }
 0x206   :  { %407 = shalt.err (!%p404_p4)
}
 0x207   :  { %s408_s0 = scalar_lea.hbm %s572_s7, 128 }
 0x208   :  { %p409_p5 = scmp.ne.s32.totalorder %s572_s7, %s408_s0  ;;  %p412_p6 = scmp.lt.u32.totalorder %s408_s0, %s572_s7 }
 0x20a   :  { %p414_p7 = pnand %p412_p6, %p409_p5 }
 0x20c   :  { %417 = shalt.err (!%p414_p7)
}
 0x20d   :  { %255 = dma.vmem_to_hbm [thread:$0]  %s253_s8, 128, %s572_s7, [#allocation3]  }
 0x20e   :  { %418 = dma.done.wait [#allocation3], 128  }
 0x20f   :  { %419 = vsyncadd [#allocation3], 4294967168 }
 0x210   :  { %259 = vsyncpa [#allocation3], 1 }

</bundles_post_ra>
